<compile_context>
chip_gen: v5e
topology: v5e:2x2
jax: 0.10.0
libtpu: 0.0.40
codegen_flags: <defaults>
</compile_context>

<pallas_src>
import numpy as np
import jax
import jax.numpy as jnp
from jax.experimental import pallas as pl
from jax.experimental.pallas import tpu as pltpu

BN_EPS = 1e-5  # PyTorch BatchNorm2d default eps


def _round_up(x, m):
    return (x + m - 1) // m * m


# ---------------------------------------------------------------------------
# Pallas kernel: DoubleConv on a lane-dense (rows, W*C) layout
# ---------------------------------------------------------------------------
def _double_conv_kernel(xpad_ref, m1_ref, m2_ref, g1_ref, b1_ref, g2_ref, b2_ref,
                        vrow_ref, vcol_ref, p1_ref, bc1_ref, p2_ref, bc2_ref,
                        out_ref, mid_ref):
    """DoubleConv (conv3x3 -> BN(batch stats) -> ReLU, twice).

    xpad_ref : (Rp+2, K1p)       bf16 row-padded, lane-flattened input (+1 halo row)
    m1_ref   : (3, K1p, W*Cmid)  bf16 banded conv1 weights (one matrix per dy)
    m2_ref   : (3, W*Cmid, W*Cout) bf16 banded conv2 weights
    g*/b*    : (1, C)            f32 BN affine params (per channel, not lane-tiled)
    vrow_ref : (1, Rp)           f32, 1/(B*H*W) on valid rows, 0 on pad rows
    vcol_ref : (Rp, 1)           f32, 1 on valid rows, 0 on pad rows
    p*_ref   : (W*C, C)          0/1 lane->channel sum projector
    bc*_ref  : (C, W*C)          0/1 channel->lane broadcast matrix
    out_ref  : (Rp, W*Cout)      f32
    mid_ref  : (Rp+2, W*Cmid)    bf16 VMEM scratch staging the conv2 input (+halo rows)
    """
    R = out_ref.shape[0]
    wcm = mid_ref.shape[1]
    vrow = vrow_ref[...]          # (1, Rp), already scaled by 1/n_valid
    vcol = vcol_ref[...]          # (Rp, 1)

    def conv3rows(src_ref, m_ref):
        # Result row r uses src rows r, r+1, r+2 (= input rows r-1, r, r+1).
        # bf16 x bf16 operands, f32 MXU accumulation.
        return (jnp.dot(src_ref[0:R, :], m_ref[0], preferred_element_type=jnp.float32)
                + jnp.dot(src_ref[1:R + 1, :], m_ref[1], preferred_element_type=jnp.float32)
                + jnp.dot(src_ref[2:R + 2, :], m_ref[2], preferred_element_type=jnp.float32))

    def bn_affine(acc, p_ref, bc_ref, g_ref, b_ref):
        # Single-pass BN (E[x^2]-E[x]^2): two independent M=1 reductions, per-channel
        # scale/shift, broadcast back to lanes with a tiny 0/1 matmul, one fused FMA.
        colsum = jnp.dot(vrow, acc, preferred_element_type=jnp.float32)            # (1, WC)
        sqsum = jnp.dot(vrow, acc * acc, preferred_element_type=jnp.float32)       # (1, WC)
        mean_c = jnp.dot(colsum, p_ref[...], preferred_element_type=jnp.float32)   # (1, C)
        ex2_c = jnp.dot(sqsum, p_ref[...], preferred_element_type=jnp.float32)     # (1, C)
        var_c = ex2_c - mean_c * mean_c
        scale_c = g_ref[...] * jax.lax.rsqrt(var_c + BN_EPS)
        shift_c = b_ref[...] - mean_c * scale_c
        scale_l = jnp.dot(scale_c, bc_ref[...], preferred_element_type=jnp.float32)  # (1, WC)
        shift_l = jnp.dot(shift_c, bc_ref[...], preferred_element_type=jnp.float32)  # (1, WC)
        return acc * scale_l + shift_l

    # ---- conv1 -> BN1 -> ReLU; zero pad rows so conv2's zero-padding is honored ----
    y1 = jnp.maximum(
        bn_affine(conv3rows(xpad_ref, m1_ref), p1_ref, bc1_ref, g1_ref, b1_ref), 0.0)

    # ---- stage conv2 input (bf16): only the 2 halo rows need explicit zeroing ----
    mid_ref[0:1, :] = jnp.zeros((1, wcm), mid_ref.dtype)
    mid_ref[R + 1:R + 2, :] = jnp.zeros((1, wcm), mid_ref.dtype)
    mid_ref[1:R + 1, :] = (y1 * vcol).astype(mid_ref.dtype)

    # ---- conv2 -> BN2 -> ReLU (pad rows left unmasked; wrapper slices them off) ----
    out_ref[...] = jnp.maximum(
        bn_affine(conv3rows(mid_ref, m2_ref), p2_ref, bc2_ref, g2_ref, b2_ref), 0.0)


# ---------------------------------------------------------------------------
# Wrapper-side layout plumbing
# ---------------------------------------------------------------------------
def _banded_weights(w_hwio, W):
    """(3,3,Ci,Co) HWIO kernel -> (3, W*Ci, W*Co) banded matrices (one per dy).

    M[dy, w_in*Ci+ci, w*Co+co] = w[dy, w_in - w + 1, ci, co] if |w_in - w| <= 1 else 0.
    """
    kh, kw, ci, co = w_hwio.shape
    sel = np.zeros((W, kw, W), np.float32)          # (w_in, dx, w_out)
    for dx in range(kw):
        for w in range(W):
            w_in = w + dx - (kw // 2)
            if 0 <= w_in < W:
                sel[w_in, dx, w] = 1.0
    m = jnp.einsum('xdw,ydio->yxiwo', jnp.asarray(sel), w_hwio.astype(jnp.float32))
    return m.reshape(kh, W * ci, W * co)


def double_conv_pallas(x_nhwc, w1, g1, b1, w2, g2, b2):
    """x_nhwc: (B,H,W,Cin) f32; w*: (3,3,Ci,Co) HWIO; g*/b*: (C,).  -> (B,H,W,Cout)."""
    B, H, W, Cin = x_nhwc.shape
    Cmid, Cout = w1.shape[-1], w2.shape[-1]
    R = B * (H + 2)
    Rp = _round_up(R, 8)                 # rows padded to a sublane multiple
    K1 = W * Cin
    K1p = _round_up(K1, 128)             # conv1 contraction lanes padded to 128
    WCm, WCo = W * Cmid, W * Cout

    # Lane-dense, row-padded layout: rows = per-image [pad, H rows, pad]; lanes = W*C.
    xp = jnp.pad(x_nhwc.astype(jnp.float32), ((0, 0), (1, 1), (0, 0), (0, 0))).reshape(R, K1)
    xp = jnp.pad(xp, ((1, Rp - R + 1), (0, K1p - K1))).astype(jnp.bfloat16)  # (Rp+2, K1p)

    m1 = _banded_weights(w1, W)                                   # (3, K1,  WCm) f32
    m1 = jnp.pad(m1, ((0, 0), (0, K1p - K1), (0, 0))).astype(jnp.bfloat16)
    m2 = _banded_weights(w2, W).astype(jnp.bfloat16)              # (3, WCm, WCo)

    g1r = g1.astype(jnp.float32).reshape(1, Cmid)
    b1r = b1.astype(jnp.float32).reshape(1, Cmid)
    g2r = g2.astype(jnp.float32).reshape(1, Cout)
    b2r = b2.astype(jnp.float32).reshape(1, Cout)

    # lane->channel sum projector (W*C, C) and channel->lane broadcast (C, W*C)
    p1 = jnp.asarray(np.tile(np.eye(Cmid, dtype=np.float32), (W, 1)))
    bc1 = jnp.asarray(np.tile(np.eye(Cmid, dtype=np.float32), (1, W)))
    p2 = jnp.asarray(np.tile(np.eye(Cout, dtype=np.float32), (W, 1)))
    bc2 = jnp.asarray(np.tile(np.eye(Cout, dtype=np.float32), (1, W)))

    vr = np.zeros((Rp,), np.float32)
    for bb in range(B):
        vr[bb * (H + 2) + 1: bb * (H + 2) + 1 + H] = 1.0
    vrow = jnp.asarray((vr / float(B * H * W)).reshape(1, Rp))    # 1/n folded in
    vcol = jnp.asarray(vr.reshape(Rp, 1))

    operands = (xp, m1, m2, g1r, b1r, g2r, b2r, vrow, vcol, p1, bc1, p2, bc2)

    # Size the scoped VMEM limit from the actual single-block footprint; cap at 48 MiB
    # (safe under v7x's 64 MiB physical VMEM; v5e/v6e could go higher once gridded).
    need = sum(int(a.size) * a.dtype.itemsize for a in operands)
    need += Rp * WCo * 4 + (Rp + 2) * WCm * 2
    vmem_limit = int(min(max(4 * need, 32 * 1024 * 1024), 48 * 1024 * 1024))

    vm = pl.BlockSpec(memory_space=pltpu.MemorySpace.VMEM)
    out2d = pl.pallas_call(
        _double_conv_kernel,
        out_shape=jax.ShapeDtypeStruct((Rp, WCo), jnp.float32),
        in_specs=[vm] * len(operands),
        out_specs=vm,
        scratch_shapes=[pltpu.VMEM((Rp + 2, WCm), jnp.bfloat16)],
        compiler_params=pltpu.CompilerParams(vmem_limit_bytes=vmem_limit),
    )(*operands)

    # Drop the per-image pad rows (and row padding) and restore (B, H, W, Cout).
    return out2d[:R].reshape(B, H + 2, W, Cout)[:, 1:H + 1, :, :]


def down_forward(x_nchw, params):
    """Forward of Down(in_channels, out_channels): MaxPool2d(2) -> DoubleConv. NCHW in/out."""
    w1, g1, b1, w2, g2, b2 = params
    x = jnp.transpose(x_nchw, (0, 2, 3, 1)).astype(jnp.float32)     # NHWC
    B, H0, W0, C = x.shape
    H, W = H0 // 2, W0 // 2
    x = x[:, :2 * H, :2 * W, :]
    pooled = jnp.max(x.reshape(B, H, 2, W, 2, C), axis=(2, 4))      # MaxPool2d(2)
    y = double_conv_pallas(pooled, w1, g1, b1, w2, g2, b2)
    return jnp.transpose(y, (0, 3, 1, 2))                           # back to NCHW


# ---------------------------------------------------------------------------
# Pure-JAX reference (same math) for the correctness check
# ---------------------------------------------------------------------------
def _reference_down(x_nchw, w1, g1, b1, w2, g2, b2, *, round_bf16=False):
    # round_bf16=True mirrors the kernel's bf16 MXU operand rounding (f32 accumulation),
    # giving a tight apples-to-apples check; False is the pure-f32 module semantics.
    cast = ((lambda a: a.astype(jnp.bfloat16).astype(jnp.float32)) if round_bf16
            else (lambda a: a))
    x = jnp.transpose(x_nchw, (0, 2, 3, 1)).astype(jnp.float32)
    B, H0, W0, C = x.shape
    H, W = H0 // 2, W0 // 2
    x = jnp.max(x[:, :2 * H, :2 * W, :].reshape(B, H, 2, W, 2, C), axis=(2, 4))

    def conv(x, w):
        return jax.lax.conv_general_dilated(
            cast(x), cast(w), window_strides=(1, 1), padding='SAME',
            dimension_numbers=('NHWC', 'HWIO', 'NHWC'),
            precision=jax.lax.Precision.HIGHEST)

    def bn_relu(x, g, b):
        mean = jnp.mean(x, axis=(0, 1, 2), keepdims=True)
        var = jnp.mean((x - mean) ** 2, axis=(0, 1, 2), keepdims=True)
        return jnp.maximum((x - mean) * jax.lax.rsqrt(var + BN_EPS) * g + b, 0.0)

    y = bn_relu(conv(x, w1), g1, b1)
    y = bn_relu(conv(y, w2), g2, b2)
    return jnp.transpose(y, (0, 3, 1, 2))


if __name__ == "__main__":
    # Down(in_channels=4, out_channels=8): x (B, 4, H0, W0) -> (B, 8, H0/2, W0/2)
    B, in_ch, out_ch = 2, 4, 8
    mid_ch = out_ch                      # DoubleConv default mid_channels
    H0 = W0 = 32
    key = jax.random.PRNGKey(0)
    kx, kw1, kw2, kg1, kb1, kg2, kb2 = jax.random.split(key, 7)

    x = jax.random.normal(kx, (B, in_ch, H0, W0), jnp.float32)
    # Deterministic synthetic params (HWIO conv weights, BN affine).
    w1 = 0.1 * jax.random.normal(kw1, (3, 3, in_ch, mid_ch), jnp.float32)
    w2 = 0.1 * jax.random.normal(kw2, (3, 3, mid_ch, out_ch), jnp.float32)
    g1 = 1.0 + 0.1 * jax.random.normal(kg1, (mid_ch,), jnp.float32)
    b1 = 0.1 * jax.random.normal(kb1, (mid_ch,), jnp.float32)
    g2 = 1.0 + 0.1 * jax.random.normal(kg2, (out_ch,), jnp.float32)
    b2 = 0.1 * jax.random.normal(kb2, (out_ch,), jnp.float32)
    params = (w1, g1, b1, w2, g2, b2)

    out = jax.block_until_ready(down_forward(x, params))
    assert out.shape == (B, out_ch, H0 // 2, W0 // 2), out.shape

    # Tight check vs a reference that applies the same bf16 operand rounding.
    ref_bf16 = _reference_down(x, *params, round_bf16=True)
    err_tight = float(jnp.max(jnp.abs(out - ref_bf16)))
    assert jnp.allclose(out, ref_bf16, atol=1e-2, rtol=1e-2), err_tight

    # Loose check vs the pure-f32 module semantics (bf16 MXU rounding dominates).
    ref_f32 = _reference_down(x, *params, round_bf16=False)
    err_loose = float(jnp.max(jnp.abs(out - ref_f32)))
    assert jnp.allclose(out, ref_f32, atol=8e-2, rtol=8e-2), err_loose

    print("KERNEL_OK")
</pallas_src>

<mosaic_0001>
module attributes {stable_mosaic.version = 11 : i64} {
  func.func @_double_conv_kernel(%arg0: memref<42x128xbf16, #tpu.memory_space<vmem>>, %arg1: memref<3x128x128xbf16, #tpu.memory_space<vmem>>, %arg2: memref<3x128x128xbf16, #tpu.memory_space<vmem>>, %arg3: memref<1x8xf32, #tpu.memory_space<vmem>>, %arg4: memref<1x8xf32, #tpu.memory_space<vmem>>, %arg5: memref<1x8xf32, #tpu.memory_space<vmem>>, %arg6: memref<1x8xf32, #tpu.memory_space<vmem>>, %arg7: memref<1x40xf32, #tpu.memory_space<vmem>>, %arg8: memref<40x1xf32, #tpu.memory_space<vmem>>, %arg9: memref<128x8xf32, #tpu.memory_space<vmem>>, %arg10: memref<8x128xf32, #tpu.memory_space<vmem>>, %arg11: memref<128x8xf32, #tpu.memory_space<vmem>>, %arg12: memref<8x128xf32, #tpu.memory_space<vmem>>, %arg13: memref<40x128xf32, #tpu.memory_space<vmem>>, %arg14: memref<42x128xbf16, #tpu.memory_space<vmem>>) attributes {dimension_semantics = [], scalar_prefetch = 0 : i64, scratch_operands = 1 : i64, tpu.core_type = #tpu.core_type<tc>} {
    %c0 = arith.constant 0 : index
    %c0_0 = arith.constant 0 : index
    %0 = vector.load %arg7[%c0, %c0_0] : memref<1x40xf32, #tpu.memory_space<vmem>>, vector<1x40xf32>
    %c0_1 = arith.constant 0 : index
    %c0_2 = arith.constant 0 : index
    %1 = vector.load %arg8[%c0_1, %c0_2] : memref<40x1xf32, #tpu.memory_space<vmem>>, vector<40x1xf32>
    %c0_3 = arith.constant 0 : index
    %c0_4 = arith.constant 0 : index
    %2 = vector.load %arg0[%c0_3, %c0_4] : memref<42x128xbf16, #tpu.memory_space<vmem>>, vector<40x128xbf16>
    %c0_5 = arith.constant 0 : index
    %c0_6 = arith.constant 0 : index
    %c0_7 = arith.constant 0 : index
    %3 = vector.load %arg1[%c0_5, %c0_6, %c0_7] : memref<3x128x128xbf16, #tpu.memory_space<vmem>>, vector<1x128x128xbf16>
    %4 = vector.shape_cast %3 : vector<1x128x128xbf16> to vector<128x128xbf16>
    %cst = arith.constant dense<0.000000e+00> : vector<40x128xf32>
    %5 = tpu.matmul %2, %4, %cst {dimension_numbers = #tpu.dot_dimension_numbers<[1], [0], [0], [1], [0, 0, 1, 1], [], []>} : vector<40x128xbf16>, vector<128x128xbf16>, vector<40x128xf32> -> vector<40x128xf32>
    %c1 = arith.constant 1 : index
    %c0_8 = arith.constant 0 : index
    %6 = vector.load %arg0[%c1, %c0_8] : memref<42x128xbf16, #tpu.memory_space<vmem>>, vector<40x128xbf16>
    %c1_9 = arith.constant 1 : index
    %c0_10 = arith.constant 0 : index
    %c0_11 = arith.constant 0 : index
    %7 = vector.load %arg1[%c1_9, %c0_10, %c0_11] : memref<3x128x128xbf16, #tpu.memory_space<vmem>>, vector<1x128x128xbf16>
    %8 = vector.shape_cast %7 : vector<1x128x128xbf16> to vector<128x128xbf16>
    %cst_12 = arith.constant dense<0.000000e+00> : vector<40x128xf32>
    %9 = tpu.matmul %6, %8, %cst_12 {dimension_numbers = #tpu.dot_dimension_numbers<[1], [0], [0], [1], [0, 0, 1, 1], [], []>} : vector<40x128xbf16>, vector<128x128xbf16>, vector<40x128xf32> -> vector<40x128xf32>
    %10 = arith.addf %5, %9 : vector<40x128xf32>
    %c2 = arith.constant 2 : index
    %c0_13 = arith.constant 0 : index
    %11 = vector.load %arg0[%c2, %c0_13] : memref<42x128xbf16, #tpu.memory_space<vmem>>, vector<40x128xbf16>
    %c2_14 = arith.constant 2 : index
    %c0_15 = arith.constant 0 : index
    %c0_16 = arith.constant 0 : index
    %12 = vector.load %arg1[%c2_14, %c0_15, %c0_16] : memref<3x128x128xbf16, #tpu.memory_space<vmem>>, vector<1x128x128xbf16>
    %13 = vector.shape_cast %12 : vector<1x128x128xbf16> to vector<128x128xbf16>
    %cst_17 = arith.constant dense<0.000000e+00> : vector<40x128xf32>
    %14 = tpu.matmul %11, %13, %cst_17 {dimension_numbers = #tpu.dot_dimension_numbers<[1], [0], [0], [1], [0, 0, 1, 1], [], []>} : vector<40x128xbf16>, vector<128x128xbf16>, vector<40x128xf32> -> vector<40x128xf32>
    %15 = arith.addf %10, %14 : vector<40x128xf32>
    %cst_18 = arith.constant dense<0.000000e+00> : vector<1x128xf32>
    %16 = tpu.matmul %0, %15, %cst_18 {dimension_numbers = #tpu.dot_dimension_numbers<[1], [0], [0], [1], [0, 0, 1, 1], [], []>} : vector<1x40xf32>, vector<40x128xf32>, vector<1x128xf32> -> vector<1x128xf32>
    %17 = arith.mulf %15, %15 : vector<40x128xf32>
    %cst_19 = arith.constant dense<0.000000e+00> : vector<1x128xf32>
    %18 = tpu.matmul %0, %17, %cst_19 {dimension_numbers = #tpu.dot_dimension_numbers<[1], [0], [0], [1], [0, 0, 1, 1], [], []>} : vector<1x40xf32>, vector<40x128xf32>, vector<1x128xf32> -> vector<1x128xf32>
    %c0_20 = arith.constant 0 : index
    %c0_21 = arith.constant 0 : index
    %19 = vector.load %arg9[%c0_20, %c0_21] : memref<128x8xf32, #tpu.memory_space<vmem>>, vector<128x8xf32>
    %cst_22 = arith.constant dense<0.000000e+00> : vector<1x8xf32>
    %20 = tpu.matmul %16, %19, %cst_22 {dimension_numbers = #tpu.dot_dimension_numbers<[1], [0], [0], [1], [0, 0, 1, 1], [], []>} : vector<1x128xf32>, vector<128x8xf32>, vector<1x8xf32> -> vector<1x8xf32>
    %c0_23 = arith.constant 0 : index
    %c0_24 = arith.constant 0 : index
    %21 = vector.load %arg9[%c0_23, %c0_24] : memref<128x8xf32, #tpu.memory_space<vmem>>, vector<128x8xf32>
    %cst_25 = arith.constant dense<0.000000e+00> : vector<1x8xf32>
    %22 = tpu.matmul %18, %21, %cst_25 {dimension_numbers = #tpu.dot_dimension_numbers<[1], [0], [0], [1], [0, 0, 1, 1], [], []>} : vector<1x128xf32>, vector<128x8xf32>, vector<1x8xf32> -> vector<1x8xf32>
    %23 = arith.mulf %20, %20 : vector<1x8xf32>
    %24 = arith.subf %22, %23 : vector<1x8xf32>
    %c0_26 = arith.constant 0 : index
    %c0_27 = arith.constant 0 : index
    %25 = vector.load %arg3[%c0_26, %c0_27] : memref<1x8xf32, #tpu.memory_space<vmem>>, vector<1x8xf32>
    %cst_28 = arith.constant 9.99999974E-6 : f32
    %26 = vector.broadcast %cst_28 : f32 to vector<1x8xf32>
    %27 = arith.addf %24, %26 : vector<1x8xf32>
    %28 = math.rsqrt %27 : vector<1x8xf32>
    %29 = arith.mulf %25, %28 : vector<1x8xf32>
    %c0_29 = arith.constant 0 : index
    %c0_30 = arith.constant 0 : index
    %30 = vector.load %arg4[%c0_29, %c0_30] : memref<1x8xf32, #tpu.memory_space<vmem>>, vector<1x8xf32>
    %31 = arith.mulf %20, %29 : vector<1x8xf32>
    %32 = arith.subf %30, %31 : vector<1x8xf32>
    %c0_31 = arith.constant 0 : index
    %c0_32 = arith.constant 0 : index
    %33 = vector.load %arg10[%c0_31, %c0_32] : memref<8x128xf32, #tpu.memory_space<vmem>>, vector<8x128xf32>
    %cst_33 = arith.constant dense<0.000000e+00> : vector<1x128xf32>
    %34 = tpu.matmul %29, %33, %cst_33 {dimension_numbers = #tpu.dot_dimension_numbers<[1], [0], [0], [1], [0, 0, 1, 1], [], []>} : vector<1x8xf32>, vector<8x128xf32>, vector<1x128xf32> -> vector<1x128xf32>
    %c0_34 = arith.constant 0 : index
    %c0_35 = arith.constant 0 : index
    %35 = vector.load %arg10[%c0_34, %c0_35] : memref<8x128xf32, #tpu.memory_space<vmem>>, vector<8x128xf32>
    %cst_36 = arith.constant dense<0.000000e+00> : vector<1x128xf32>
    %36 = tpu.matmul %32, %35, %cst_36 {dimension_numbers = #tpu.dot_dimension_numbers<[1], [0], [0], [1], [0, 0, 1, 1], [], []>} : vector<1x8xf32>, vector<8x128xf32>, vector<1x128xf32> -> vector<1x128xf32>
    %37 = vector.broadcast %34 : vector<1x128xf32> to vector<40x128xf32>
    %38 = arith.mulf %15, %37 : vector<40x128xf32>
    %39 = vector.broadcast %36 : vector<1x128xf32> to vector<40x128xf32>
    %40 = arith.addf %38, %39 : vector<40x128xf32>
    %cst_37 = arith.constant 0.000000e+00 : f32
    %41 = vector.broadcast %cst_37 : f32 to vector<40x128xf32>
    %42 = arith.maximumf %40, %41 : vector<40x128xf32>
    %cst_38 = arith.constant 0.000000e+00 : bf16
    %43 = vector.broadcast %cst_38 : bf16 to vector<1x128xbf16>
    %c0_39 = arith.constant 0 : index
    %c0_40 = arith.constant 0 : index
    %44 = vector.load %arg14[%c0_39, %c0_40] : memref<42x128xbf16, #tpu.memory_space<vmem>>, vector<1x128xbf16>
    tpu.vector_store %arg14[%c0_39, %c0_40], %43 {strides = array<i32>} : memref<42x128xbf16, #tpu.memory_space<vmem>>, vector<1x128xbf16>,
    %cst_41 = arith.constant 0.000000e+00 : bf16
    %45 = vector.broadcast %cst_41 : bf16 to vector<1x128xbf16>
    %c41 = arith.constant 41 : index
    %c0_42 = arith.constant 0 : index
    %46 = vector.load %arg14[%c41, %c0_42] : memref<42x128xbf16, #tpu.memory_space<vmem>>, vector<1x128xbf16>
    tpu.vector_store %arg14[%c41, %c0_42], %45 {strides = array<i32>} : memref<42x128xbf16, #tpu.memory_space<vmem>>, vector<1x128xbf16>,
    %47 = vector.broadcast %1 : vector<40x1xf32> to vector<40x128xf32>
    %48 = arith.mulf %42, %47 : vector<40x128xf32>
    %49 = arith.truncf %48 : vector<40x128xf32> to vector<40x128xbf16>
    %c1_43 = arith.constant 1 : index
    %c0_44 = arith.constant 0 : index
    %50 = vector.load %arg14[%c1_43, %c0_44] : memref<42x128xbf16, #tpu.memory_space<vmem>>, vector<40x128xbf16>
    tpu.vector_store %arg14[%c1_43, %c0_44], %49 {strides = array<i32>} : memref<42x128xbf16, #tpu.memory_space<vmem>>, vector<40x128xbf16>,
    %c0_45 = arith.constant 0 : index
    %c0_46 = arith.constant 0 : index
    %51 = vector.load %arg14[%c0_45, %c0_46] : memref<42x128xbf16, #tpu.memory_space<vmem>>, vector<40x128xbf16>
    %c0_47 = arith.constant 0 : index
    %c0_48 = arith.constant 0 : index
    %c0_49 = arith.constant 0 : index
    %52 = vector.load %arg2[%c0_47, %c0_48, %c0_49] : memref<3x128x128xbf16, #tpu.memory_space<vmem>>, vector<1x128x128xbf16>
    %53 = vector.shape_cast %52 : vector<1x128x128xbf16> to vector<128x128xbf16>
    %cst_50 = arith.constant dense<0.000000e+00> : vector<40x128xf32>
    %54 = tpu.matmul %51, %53, %cst_50 {dimension_numbers = #tpu.dot_dimension_numbers<[1], [0], [0], [1], [0, 0, 1, 1], [], []>} : vector<40x128xbf16>, vector<128x128xbf16>, vector<40x128xf32> -> vector<40x128xf32>
    %c1_51 = arith.constant 1 : index
    %c0_52 = arith.constant 0 : index
    %55 = vector.load %arg14[%c1_51, %c0_52] : memref<42x128xbf16, #tpu.memory_space<vmem>>, vector<40x128xbf16>
    %c1_53 = arith.constant 1 : index
    %c0_54 = arith.constant 0 : index
    %c0_55 = arith.constant 0 : index
    %56 = vector.load %arg2[%c1_53, %c0_54, %c0_55] : memref<3x128x128xbf16, #tpu.memory_space<vmem>>, vector<1x128x128xbf16>
    %57 = vector.shape_cast %56 : vector<1x128x128xbf16> to vector<128x128xbf16>
    %cst_56 = arith.constant dense<0.000000e+00> : vector<40x128xf32>
    %58 = tpu.matmul %55, %57, %cst_56 {dimension_numbers = #tpu.dot_dimension_numbers<[1], [0], [0], [1], [0, 0, 1, 1], [], []>} : vector<40x128xbf16>, vector<128x128xbf16>, vector<40x128xf32> -> vector<40x128xf32>
    %59 = arith.addf %54, %58 : vector<40x128xf32>
    %c2_57 = arith.constant 2 : index
    %c0_58 = arith.constant 0 : index
    %60 = vector.load %arg14[%c2_57, %c0_58] : memref<42x128xbf16, #tpu.memory_space<vmem>>, vector<40x128xbf16>
    %c2_59 = arith.constant 2 : index
    %c0_60 = arith.constant 0 : index
    %c0_61 = arith.constant 0 : index
    %61 = vector.load %arg2[%c2_59, %c0_60, %c0_61] : memref<3x128x128xbf16, #tpu.memory_space<vmem>>, vector<1x128x128xbf16>
    %62 = vector.shape_cast %61 : vector<1x128x128xbf16> to vector<128x128xbf16>
    %cst_62 = arith.constant dense<0.000000e+00> : vector<40x128xf32>
    %63 = tpu.matmul %60, %62, %cst_62 {dimension_numbers = #tpu.dot_dimension_numbers<[1], [0], [0], [1], [0, 0, 1, 1], [], []>} : vector<40x128xbf16>, vector<128x128xbf16>, vector<40x128xf32> -> vector<40x128xf32>
    %64 = arith.addf %59, %63 : vector<40x128xf32>
    %cst_63 = arith.constant dense<0.000000e+00> : vector<1x128xf32>
    %65 = tpu.matmul %0, %64, %cst_63 {dimension_numbers = #tpu.dot_dimension_numbers<[1], [0], [0], [1], [0, 0, 1, 1], [], []>} : vector<1x40xf32>, vector<40x128xf32>, vector<1x128xf32> -> vector<1x128xf32>
    %66 = arith.mulf %64, %64 : vector<40x128xf32>
    %cst_64 = arith.constant dense<0.000000e+00> : vector<1x128xf32>
    %67 = tpu.matmul %0, %66, %cst_64 {dimension_numbers = #tpu.dot_dimension_numbers<[1], [0], [0], [1], [0, 0, 1, 1], [], []>} : vector<1x40xf32>, vector<40x128xf32>, vector<1x128xf32> -> vector<1x128xf32>
    %c0_65 = arith.constant 0 : index
    %c0_66 = arith.constant 0 : index
    %68 = vector.load %arg11[%c0_65, %c0_66] : memref<128x8xf32, #tpu.memory_space<vmem>>, vector<128x8xf32>
    %cst_67 = arith.constant dense<0.000000e+00> : vector<1x8xf32>
    %69 = tpu.matmul %65, %68, %cst_67 {dimension_numbers = #tpu.dot_dimension_numbers<[1], [0], [0], [1], [0, 0, 1, 1], [], []>} : vector<1x128xf32>, vector<128x8xf32>, vector<1x8xf32> -> vector<1x8xf32>
    %c0_68 = arith.constant 0 : index
    %c0_69 = arith.constant 0 : index
    %70 = vector.load %arg11[%c0_68, %c0_69] : memref<128x8xf32, #tpu.memory_space<vmem>>, vector<128x8xf32>
    %cst_70 = arith.constant dense<0.000000e+00> : vector<1x8xf32>
    %71 = tpu.matmul %67, %70, %cst_70 {dimension_numbers = #tpu.dot_dimension_numbers<[1], [0], [0], [1], [0, 0, 1, 1], [], []>} : vector<1x128xf32>, vector<128x8xf32>, vector<1x8xf32> -> vector<1x8xf32>
    %72 = arith.mulf %69, %69 : vector<1x8xf32>
    %73 = arith.subf %71, %72 : vector<1x8xf32>
    %c0_71 = arith.constant 0 : index
    %c0_72 = arith.constant 0 : index
    %74 = vector.load %arg5[%c0_71, %c0_72] : memref<1x8xf32, #tpu.memory_space<vmem>>, vector<1x8xf32>
    %cst_73 = arith.constant 9.99999974E-6 : f32
    %75 = vector.broadcast %cst_73 : f32 to vector<1x8xf32>
    %76 = arith.addf %73, %75 : vector<1x8xf32>
    %77 = math.rsqrt %76 : vector<1x8xf32>
    %78 = arith.mulf %74, %77 : vector<1x8xf32>
    %c0_74 = arith.constant 0 : index
    %c0_75 = arith.constant 0 : index
    %79 = vector.load %arg6[%c0_74, %c0_75] : memref<1x8xf32, #tpu.memory_space<vmem>>, vector<1x8xf32>
    %80 = arith.mulf %69, %78 : vector<1x8xf32>
    %81 = arith.subf %79, %80 : vector<1x8xf32>
    %c0_76 = arith.constant 0 : index
    %c0_77 = arith.constant 0 : index
    %82 = vector.load %arg12[%c0_76, %c0_77] : memref<8x128xf32, #tpu.memory_space<vmem>>, vector<8x128xf32>
    %cst_78 = arith.constant dense<0.000000e+00> : vector<1x128xf32>
    %83 = tpu.matmul %78, %82, %cst_78 {dimension_numbers = #tpu.dot_dimension_numbers<[1], [0], [0], [1], [0, 0, 1, 1], [], []>} : vector<1x8xf32>, vector<8x128xf32>, vector<1x128xf32> -> vector<1x128xf32>
    %c0_79 = arith.constant 0 : index
    %c0_80 = arith.constant 0 : index
    %84 = vector.load %arg12[%c0_79, %c0_80] : memref<8x128xf32, #tpu.memory_space<vmem>>, vector<8x128xf32>
    %cst_81 = arith.constant dense<0.000000e+00> : vector<1x128xf32>
    %85 = tpu.matmul %81, %84, %cst_81 {dimension_numbers = #tpu.dot_dimension_numbers<[1], [0], [0], [1], [0, 0, 1, 1], [], []>} : vector<1x8xf32>, vector<8x128xf32>, vector<1x128xf32> -> vector<1x128xf32>
    %86 = vector.broadcast %83 : vector<1x128xf32> to vector<40x128xf32>
    %87 = arith.mulf %64, %86 : vector<40x128xf32>
    %88 = vector.broadcast %85 : vector<1x128xf32> to vector<40x128xf32>
    %89 = arith.addf %87, %88 : vector<40x128xf32>
    %cst_82 = arith.constant 0.000000e+00 : f32
    %90 = vector.broadcast %cst_82 : f32 to vector<40x128xf32>
    %91 = arith.maximumf %89, %90 : vector<40x128xf32>
    %c0_83 = arith.constant 0 : index
    %c0_84 = arith.constant 0 : index
    %92 = vector.load %arg13[%c0_83, %c0_84] : memref<40x128xf32, #tpu.memory_space<vmem>>, vector<40x128xf32>
    tpu.vector_store %arg13[%c0_83, %c0_84], %91 {strides = array<i32>} : memref<40x128xf32, #tpu.memory_space<vmem>>, vector<40x128xf32>,
    return
  }
}

</mosaic_0001>

<bundles_post_ra>
// kernel: tpu_custom_call.1
= control target key start
LH: loop header
LB: loop body
LE: loop exit
PB: predicated region body
PF: predicated region fallthrough
CT: control target
= control target key end

     0   :  { %18 = vsyncpa [#allocation4], 0  ;;  %s2032_s0 = inlined_call_operand.vmem [shape: bf16[42,128], index: 0, kind: input, shape index: {}]   ;;  %s2033_s1 = inlined_call_operand.vmem [shape: bf16[3,128,128], index: 1, kind: input, shape index: {}]   ;;  %s2034_s2 = inlined_call_operand.hbm [shape: bf16[3,128,128], index: 2, kind: input, shape index: {}]   ;;  %s2035_s3 = inlined_call_operand.vmem [shape: f32[1,8], index: 3, kind: input, shape index: {}]   ;;  %s2036_s4 = inlined_call_operand.vmem [shape: f32[1,8], index: 4, kind: input, shape index: {}]   ;;  %s2037_s5 = inlined_call_operand.vmem [shape: f32[1,8], index: 5, kind: input, shape index: {}]   ;;  %s2038_s6 = inlined_call_operand.vmem [shape: f32[1,8], index: 6, kind: input, shape index: {}]   ;;  %s2039_s7 = inlined_call_operand.vmem [shape: f32[1,40], index: 7, kind: input, shape index: {}]   ;;  %s2040_s8 = inlined_call_operand.vmem [shape: f32[40,1], index: 8, kind: input, shape index: {}]   ;;  %s2041_s9 = inlined_call_operand.vmem [shape: f32[128,8], index: 9, kind: input, shape index: {}]   ;;  %s2042_s10 = inlined_call_operand.vmem [shape: f32[8,128], index: 10, kind: input, shape index: {}]   ;;  %s2043_s11 = inlined_call_operand.vmem [shape: f32[128,8], index: 11, kind: input, shape index: {}]   ;;  %s2044_s12 = inlined_call_operand.vmem [shape: f32[8,128], index: 12, kind: input, shape index: {}]   ;;  %s2045_s13 = inlined_call_operand.hbm [shape: f32[40,128], index: 13, kind: output, shape index: {}]  }
   0x1   :  { %19 = vsyncpa [#allocation5], 0  ;;  %s28_s27 = sshll.u32 %s2034_s2, 4  ;;  %s1607_s28 = smov [#allocation3]   ;;  %s29_s27 = int_to_ptr.hbm [resolvable:$true] %s28_s27 }
   0x2   :  { %s30_s29 = sshll.u32 %s1607_s28, 4  ;;  %s1608_s30 = smov 64   ;;  %s31_s29 = int_to_ptr.vmem [resolvable:$true] %s30_s29 }
   0x3   :  { %s1609_s14 = smov 4  }
   0x4   :  { %36 = dma.hbm_to_vmem [thread:$0]  %s29_s27, 3072, %s31_s29, [#allocation4], %s1608_s30, %s1608_s30, %s1609_s14  }
   0x5   :  { %1603 = dma.done.wait [#allocation4], 3072  }
   0x6   :  { %1604 = vsyncadd [#allocation4], 4294964224  ;;  %v1493_v0 = vld [vmem:[%s2033_s1 + $0x78] sm:$0xff]  ;;  %v1492_v3 = vld [vmem:[%s2033_s1 + $0x70] sm:$0xff]  ;;  %vm122_vm0 = vsmask.f32 7424 }
   0x7   :  { %v1485_v1 = vld [vmem:[%s2033_s1 + $0x38] sm:$0xff]  ;;  %197 = vmatpush.bf16.msra.mxu0 %v1493_v0  ;;  %v1484_v4 = vld [vmem:[%s2033_s1 + $0x30] sm:$0xff]  ;;  %v1491_v6 = vld [vmem:[%s2033_s1 + $0x68] sm:$0xff]  ;;  %vm316_vm1 = vcmask 1046528   ;;  %vm401_vm2 = vcmask 326656   ;;  %vm525_vm6 = vcmask 64512  }
   0x8   :  { %v1501_v2 = vld [vmem:[%s2033_s1 + $0xb8] sm:$0xff]  ;;  %272 = vmatpush.bf16.msra.mxu1 %v1485_v1  ;;  %v1500_v5 = vld [vmem:[%s2033_s1 + $0xb0] sm:$0xff]  ;;  %v1483_v7 = vld [vmem:[%s2033_s1 + $0x28] sm:$0xff]  ;;  %vm589_vm7 = vcmask 1040384   ;;  %vm590_vm8 = vsmask.f32 256 }
   0x9   :  { %373 = vmatpush.bf16.msra.mxu2 %v1501_v2  ;;  %v1499_v8 = vld [vmem:[%s2033_s1 + $0xa8] sm:$0xff]  ;;  %v1490_v9 = vld [vmem:[%s2033_s1 + $0x60] sm:$0xff]  ;;  %v1489_v12 = vld [vmem:[%s2033_s1 + $0x58] sm:$0xff]  ;;  %vm595_vm9 = vsmask.f32 7938  ;;  %vm687_vm13 = vcmask 1043456  }
   0xa   :  { %v1482_v10 = vld [vmem:[%s2033_s1 + $0x20] sm:$0xff]  ;;  %v1481_v13 = vld [vmem:[%s2033_s1 + $0x18] sm:$0xff]  ;;  %v1488_v16 = vld [vmem:[%s2033_s1 + $0x50] sm:$0xff]  ;;  %vm635_vm12 = vsmask.f32 4368  ;;  %s1224_s16 = sshll.u32 %s2045_s13, 4  ;;  %s1225_s16 = int_to_ptr.hbm [resolvable:$true] %s1224_s16 }
   0xb   :  { %198 = vmatpush.bf16.msra.mxu0 %v1492_v3  ;;  %v1498_v11 = vld [vmem:[%s2033_s1 + $0xa0] sm:$0xff]  ;;  %v1497_v14 = vld [vmem:[%s2033_s1 + $0x98] sm:$0xff]  ;;  %v1480_v17 = vld [vmem:[%s2033_s1 + $0x10] sm:$0xff]  ;;  %s1612_s17 = smov 128   ;;  %s1613_s18 = smov 8  }
   0xc   :  { %273 = vmatpush.bf16.msra.mxu1 %v1484_v4  ;;  %v1528_v15 = vld [vmem:[%s2032_s0] sm:$0xff]   ;;  %v1477_v18 = vld [vmem:[%s2032_s0 + $0x8] sm:$0xff]  ;;  %v1496_v20 = vld [vmem:[%s2033_s1 + $0x90] sm:$0xff] }
   0xd   :  { %374 = vmatpush.bf16.msra.mxu2 %v1500_v5  ;;  %v126_v19 = vshll.u32 %v1528_v15, 16  ;;  %v1535_v21 = vld [vmem:[%s2032_s0] sm:$0xf0]  ;;  %v1536_v22 = vld [vmem:[%s2032_s0] sm:$0xe]  ;;  %v1487_v23 = vld [vmem:[%s2033_s1 + $0x48] sm:$0xff] }
   0xe   :  { %v1479_v24 = vld [vmem:[%s2033_s1 + $0x8] sm:$0xff]  ;;  %v124_v25 = vshrl.u32 %v1528_v15, 16  ;;  %v131_v27 = vshll.u32 %v1477_v18, 16  ;;  %v1537_v29 = vor.u32 %v1536_v22, %v1535_v21  ;;  %v1486_v30 = vld [vmem:[%s2033_s1 + $0x40] sm:$0xff]  ;;  %v318_v36 = vrot.slane %v1477_v18, 1  ;;  %v1784_v1 = vld [vmem:[%s2041_s9 + $0x78] sm:$0xff] }
   0xf   :  { %199 = vmatpush.bf16.msra.mxu0 %v1491_v6  ;;  %v128_v26 = vrot.slane %v126_v19, 1  ;;  %v1495_v28 = vld [vmem:[%s2033_s1 + $0x88] sm:$0xff]  ;;  %v1478_v31 = vld [vmem:[%s2033_s1] sm:$0xff]  ;;  %v72_v37 = vld [vmem:[%s2032_s0 + $0x10] sm:$0xf]  ;;  %v135_v44 = vshrl.u32 %v1477_v18, 16 }
  0x10   :  { %274 = vmatpush.bf16.msra.mxu1 %v1483_v7  ;;  %v1494_v32 = vld [vmem:[%s2033_s1 + $0x80] sm:$0xff]  ;;  %v133_v34 = vrot.slane %v131_v27, 1  ;;  %v317_v35 = vrot.slane %v1537_v29, 1  ;;  %v89_v38 = vld [vmem:[%s2032_s0 + $0x14] sm:$0x1]  ;;  %v117_v40 = vunpack.c.l.b16 %v72_v37  ;;  %v463_v6 = vld [vmem:[%s2041_s9 + $0x68] sm:$0xff] }
  0x11   :  { %375 = vmatpush.bf16.msra.mxu2 %v1499_v8  ;;  %v129_v33 = vor.u32 %v128_v26, %v124_v25  ;;  %v118_v41 = vunpack.c.l.b16 %v89_v38  ;;  %v1790_v2 = vld [vmem:[%s2041_s9 + $0x70] sm:$0xff]  ;;  %v462_v7 = vld [vmem:[%s2041_s9 + $0x60] sm:$0xff]  ;;  %v451_v37 = vld [vmem:[%s2041_s9 + $0x8] sm:$0xff] }
  0x12   :  { %v319_v42 = vsel %vm316_vm1, %v317_v35, %v318_v36  ;;  %v137_v46 = vor.u32 %v135_v44, %v133_v34  ;;  %v220_v53 = vpack.c.b16 %v117_v40, %v117_v40  ;;  %v458_v19 = vld [vmem:[%s2041_s9 + $0x40] sm:$0xff]  ;;  %v456_v25 = vld [vmem:[%s2041_s9 + $0x30] sm:$0xff]  ;;  %vm1898_vm10 = vmand %vm589_vm7, %vm590_vm8 }
  0x13   :  { %200 = vmatpush.bf16.msra.mxu0 %v1490_v9  ;;  %v134_v39 = vsel %vm122_vm0, %v129_v33, %v133_v34  ;;  %v121_v43 = vpack.c.b16 %v118_v41, %v117_v40  ;;  %v461_v9 = vld [vmem:[%s2041_s9 + $0x58] sm:$0xff]  ;;  %v452_v35 = vld [vmem:[%s2041_s9 + $0x10] sm:$0xff]  ;;  %v63_v44 = vld [vmem:[%s2040_s8] sm:$0xff] }
  0x14   :  { %275 = vmatpush.bf16.msra.mxu1 %v1482_v10  ;;  %v460_v10 = vld [vmem:[%s2041_s9 + $0x50] sm:$0xff]  ;;  %v453_v33 = vld [vmem:[%s2041_s9 + $0x18] sm:$0xff]  ;;  %vm596_vm11 = vmand %vm589_vm7, %vm595_vm9 }
  0x15   :  { %376 = vmatpush.bf16.msra.mxu2 %v1498_v11  ;;  %v139_v45 = vshll.u32 %v121_v43, 16  ;;  %v320_v48 = vrot.slane %v121_v43, 1  ;;  %v143_v51 = vshrl.u32 %v121_v43, 16  ;;  %v65_v43 = vld [vmem:[%s2040_s8 + $0x10] sm:$0xff]  ;;  %vm1911_vm14 = vmor %vm590_vm8, %vm635_vm12 }
  0x16   :  { %vm1916_vm15 = vmand %vm687_vm13, %vm595_vm9 }
  0x17   :  { %201 = vmatpush.bf16.msra.mxu0 %v1489_v12  ;;  %v141_v47 = vrot.slane %v139_v45, 1  ;;  %v321_v50 = vsel %vm316_vm1, %v318_v36, %v320_v48 }
  0x18   :  { %276 = vmatpush.bf16.msra.mxu1 %v1481_v13 }
  0x19   :  { %377 = vmatpush.bf16.msra.mxu2 %v1497_v14  ;;  %v142_v49 = vsel %vm122_vm0, %v137_v46, %v141_v47  ;;  %v145_v52 = vor.u32 %v143_v51, %v141_v47  ;;  %v1610_v46 = vmov 0   ;;  %v67_v47 = vld [vmem:[%s2040_s8 + $0x20] sm:$0xff] }
  0x1a   :  { %1549 = vset.pattern.permute.xlu1 %v1610_v46  ;;  %1548 = vset.pattern.permute.xlu0 %v1610_v46 }
  0x1b   :  { %202 = vmatpush.bf16.msra.mxu0 %v1488_v16  ;;  %612 = vperm.xlu1 %1549, %v65_v43  }
  0x1c   :  { %277 = vmatpush.bf16.msra.mxu1 %v1480_v17  ;;  %v459_v17 = vld [vmem:[%s2041_s9 + $0x48] sm:$0xff]  ;;  %602 = vperm.xlu0 %1548, %v63_v44  }
  0x1d   :  { %378 = vmatpush.bf16.msra.mxu2 %v1496_v20  ;;  %1550 = vset.pattern.permute.xlu2 %v1610_v46 }
  0x1e   :  { %622 = vperm.xlu2 %1550, %v67_v47  }
  0x1f   :  { %203 = vmatpush.bf16.msra.mxu0 %v1487_v23  ;;  %v457_v23 = vld [vmem:[%s2041_s9 + $0x38] sm:$0xff] }
  0x20   :  { %278 = vmatpush.bf16.msra.mxu1 %v1479_v24 }
  0x21   :  { %379 = vmatpush.bf16.msra.mxu2 %v1495_v28  ;;  %v455_v28 = vld [vmem:[%s2041_s9 + $0x28] sm:$0xff] }
  0x23   :  { %204 = vmatpush.bf16.msra.mxu0 %v1486_v30  ;;  %v1839_v30 = vld [vmem:[%s2039_s7] sm:$0x1] }
  0x24   :  { %279 = vmatpush.bf16.msra.mxu1 %v1478_v31  ;;  %v454_v31 = vld [vmem:[%s2041_s9 + $0x20] sm:$0xff] }
  0x25   :  { %380 = vmatpush.bf16.msra.mxu2 %v1494_v32 }
  0x26   :  { %205 = vmatmul.bf16.vlgmr.msra.gmra.mxu0 %v134_v39  ;;  %v450_v39 = vld [vmem:[%s2041_s9] sm:$0xff] }
  0x27   :  { %280 = vmatmul.bf16.vlgmr.msra.gmra.mxu1 %v1528_v15  ;;  %486 = vmatpush.msrb.mxu0 %v1784_v1 }
  0x28   :  { %381 = vmatmul.bf16.vlgmr.msra.gmra.mxu2 %v319_v42  ;;  %v524_v42 = vld [vmem:[%s2042_s10] sm:$0xff] }
  0x29   :  { %487 = vmatpush.msrb.mxu0 %v1790_v2 }
  0x2b   :  { %488 = vmatpush.msrb.mxu0 %v463_v6 }
  0x2d   :  { %489 = vmatpush.msrb.mxu0 %v462_v7 }
  0x2f   :  { %490 = vmatpush.msrb.mxu0 %v461_v9 }
  0x31   :  { %491 = vmatpush.msrb.mxu0 %v460_v10 }
  0x33   :  { %492 = vmatpush.msrb.mxu0 %v459_v17 }
  0x35   :  { %493 = vmatpush.msrb.mxu0 %v458_v19 }
  0x36   :  { %210 = vmatmul.bf16.gmra.mxu0 %v142_v49 }
  0x37   :  { %285 = vmatmul.bf16.gmra.mxu1 %v1477_v18  ;;  %494 = vmatpush.msrb.mxu0 %v457_v23 }
  0x38   :  { %386 = vmatmul.bf16.gmra.mxu2 %v321_v50  ;;  %v1518_v50 = vld [vmem:[#allocation3 + $0x78] sm:$0xff] }
  0x39   :  { %495 = vmatpush.msrb.mxu0 %v456_v25  ;;  %827 = vmatpush.bf16.msrb.mxu1 %v1518_v50 }
  0x3b   :  { %496 = vmatpush.msrb.mxu0 %v455_v28 }
  0x3d   :  { %497 = vmatpush.msrb.mxu0 %v454_v31 }
  0x3f   :  { %498 = vmatpush.msrb.mxu0 %v453_v33 }
  0x41   :  { %499 = vmatpush.msrb.mxu0 %v452_v35 }
  0x43   :  { %500 = vmatpush.msrb.mxu0 %v451_v37 }
  0x45   :  { %501 = vmatpush.msrb.mxu0 %v450_v39 }
  0x46   :  { %215 = vmatmul.bf16.gmra.mxu0 %v145_v52  ;;  %v1509_v52 = vld [vmem:[#allocation3 + $0x30] sm:$0xff] }
  0x47   :  { %290 = vmatmul.bf16.gmra.mxu1 %v220_v53  ;;  %544 = vmatpush.msra.mxu0 %v524_v42 }
  0x48   :  { %391 = vmatmul.bf16.gmra.mxu2 %v320_v48  ;;  %v1510_v48 = vld [vmem:[#allocation3 + $0x38] sm:$0xff] }
  0x49   :  { %902 = vmatpush.bf16.msrb.mxu2 %v1510_v48 }
  0x4d   :  { %903 = vmatpush.bf16.msrb.mxu2 %v1509_v52 }
  0xa3   :  { %v206_v54 = vpop.f32.mrf.mxu0 }
  0xa4   :  { %v281_v55 = vpop.f32.mrf.mxu1 }
  0xa5   :  { %v282_v20 = vadd.f32 %v281_v55, %v206_v54  ;;  %v66_v55 = vld [vmem:[%s2040_s8 + $0x18] sm:$0xff] }
  0xa6   :  { %617 = vperm.xlu1 %1549, %v66_v55  }
  0xab   :  { %v382_v56 = vpop.f32.mrf.mxu2  ;;  %v208_v57 = vpop.f32.mrf.mxu0 }
  0xac   :  { %v283_v58 = vpop.f32.mrf.mxu1  ;;  %v1828_v27 = vadd.f32 %v382_v56, %v282_v20  ;;  %v64_v56 = vld [vmem:[%s2040_s8 + $0x8] sm:$0xff]  ;;  %v1515_v20 = vld [vmem:[#allocation3 + $0x60] sm:$0xff] }
  0xad   :  { %v284_v21 = vadd.f32 %v283_v58, %v208_v57  ;;  %607 = vperm.xlu0 %1548, %v64_v56   ;;  %v623_v56 = vpop.permute.xlu2 %622 }
  0xae   :  { %v425_v38 = vmul.f32 %v1828_v27, %v1828_v27 }
  0xb3   :  { %v384_v59 = vpop.f32.mrf.mxu2  ;;  %v211_v60 = vpop.f32.mrf.mxu0 }
  0xb4   :  { %v286_v61 = vpop.f32.mrf.mxu1  ;;  %v1822_v24 = vadd.f32 %v384_v59, %v284_v21  ;;  %v1523_v21 = vld [vmem:[#allocation3 + $0xa0] sm:$0xff] }
  0xb5   :  { %v287_v12 = vadd.f32 %v286_v61, %v211_v60 }
  0xb6   :  { %v426_v36 = vmul.f32 %v1822_v24, %v1822_v24 }
  0xbb   :  { %v387_v62 = vpop.f32.mrf.mxu2  ;;  %v213_v63 = vpop.f32.mrf.mxu0 }
  0xbc   :  { %v288_v0 = vpop.f32.mrf.mxu1  ;;  %v1816_v22 = vadd.f32 %v387_v62, %v287_v12  ;;  %v508_v62 = vld [vmem:[%s2035_s3] sm:$0x1]  ;;  %v597_v12 = vld [vmem:[#allocation2 + $0x14] sm:$0x1] }
  0xbd   :  { %v289_v13 = vadd.f32 %v288_v0, %v213_v63 }
  0xbe   :  { %v427_v34 = vmul.f32 %v1816_v22, %v1816_v22 }
  0xc3   :  { %v389_v3 = vpop.f32.mrf.mxu2  ;;  %v216_v4 = vpop.f32.mrf.mxu0 }
  0xc4   :  { %v291_v5 = vpop.f32.mrf.mxu1  ;;  %v1810_v18 = vadd.f32 %v389_v3, %v289_v13  ;;  %v1516_v13 = vld [vmem:[#allocation3 + $0x68] sm:$0xff] }
  0xc5   :  { %v292_v8 = vadd.f32 %v291_v5, %v216_v4  ;;  %v1517_v5 = vld [vmem:[#allocation3 + $0x70] sm:$0xff] }
  0xc6   :  { %v428_v32 = vmul.f32 %v1810_v18, %v1810_v18  ;;  %828 = vmatpush.bf16.msrb.mxu1 %v1517_v5 }
  0xca   :  { %829 = vmatpush.bf16.msrb.mxu1 %v1516_v13 }
  0xcb   :  { %v392_v11 = vpop.f32.mrf.mxu2  ;;  %v218_v15 = vpop.f32.mrf.mxu0 }
  0xcc   :  { %v1805_v14 = vadd.f32 %v392_v11, %v292_v8  ;;  %v293_v16 = vpop.f32.mrf.mxu1  ;;  %v1525_v8 = vld [vmem:[#allocation3 + $0xb0] sm:$0xff]  ;;  %v592_v11 = vld [vmem:[#allocation2] sm:$0x1] }
  0xcd   :  { %v593_v15 = vsel %vm1898_vm10, 0, %v592_v11  ;;  %v1506_v16 = vld [vmem:[#allocation3 + $0x18] sm:$0xff] }
  0xce   :  { %416 = vmatpush.msra.mxu3 %v1805_v14  ;;  %v429_v29 = vmul.f32 %v1805_v14, %v1805_v14  ;;  %594 = vst [vmem:[#allocation2] sm:$0x1] %v593_v15  ;;  %830 = vmatpush.bf16.msrb.mxu1 %v1515_v20 }
  0xd0   :  { %417 = vmatpush.msra.mxu3 %v1810_v18 }
  0xd2   :  { %418 = vmatpush.msra.mxu3 %v1816_v22 }
  0xd3   :  { %v394_v26 = vpop.f32.mrf.mxu2 }
  0xd4   :  { %419 = vmatpush.msra.mxu3 %v1822_v24  ;;  %v1514_v26 = vld [vmem:[#allocation3 + $0x58] sm:$0xff] }
  0xd5   :  { %831 = vmatpush.bf16.msrb.mxu1 %v1514_v26 }
  0xd6   :  { %420 = vmatpush.msra.mxu3 %v1828_v27 }
  0xd7   :  { %1369 = vmatmul.msk.f32.vlgmr.msra.gmra.mxu3 %vm401_vm2, %v1839_v30 }
  0xd8   :  { %441 = vmatpush.msrb.mxu3 %v429_v29  ;;  %v1513_v29 = vld [vmem:[#allocation3 + $0x50] sm:$0xff] }
  0xd9   :  { %832 = vmatpush.bf16.msrb.mxu1 %v1513_v29 }
  0xda   :  { %442 = vmatpush.msrb.mxu3 %v428_v32  ;;  %v1503_v32 = vld [vmem:[#allocation3] sm:$0xff] }
  0xdc   :  { %443 = vmatpush.msrb.mxu3 %v427_v34  ;;  %v1520_v34 = vld [vmem:[#allocation3 + $0x88] sm:$0xff] }
  0xde   :  { %444 = vmatpush.msrb.mxu3 %v426_v36  ;;  %v613_v36 = vpop.permute.xlu1 %612 }
  0xe0   :  { %445 = vmatpush.msrb.mxu3 %v425_v38 }
  0xe1   :  { %1370 = vmatmul.msk.f32.vlgmr.msrb.gmra.mxu3 %vm401_vm2, %v1839_v30 }
  0xe2   :  { %466 = vmatpush.msra.mxu3 %v1784_v1 }
  0xe4   :  { %467 = vmatpush.msra.mxu3 %v1790_v2  ;;  %v521_v2 = vld [vmem:[%s2036_s4] sm:$0x1] }
  0xe6   :  { %468 = vmatpush.msra.mxu3 %v463_v6  ;;  %v1508_v6 = vld [vmem:[#allocation3 + $0x28] sm:$0xff] }
  0xe7   :  { %904 = vmatpush.bf16.msrb.mxu2 %v1508_v6 }
  0xe8   :  { %469 = vmatpush.msra.mxu3 %v462_v7  ;;  %v1526_v7 = vld [vmem:[#allocation3 + $0xb8] sm:$0xff] }
  0xea   :  { %470 = vmatpush.msra.mxu3 %v461_v9  ;;  %v1507_v9 = vld [vmem:[#allocation3 + $0x20] sm:$0xff] }
  0xeb   :  { %905 = vmatpush.bf16.msrb.mxu2 %v1507_v9 }
  0xec   :  { %471 = vmatpush.msra.mxu3 %v460_v10 }
  0xee   :  { %472 = vmatpush.msra.mxu3 %v459_v17  ;;  %v598_v17 = vsel %vm596_vm11, 0, %v597_v12 }
  0xef   :  { %599 = vst [vmem:[#allocation2 + $0x14] sm:$0x1] %v598_v17  ;;  %906 = vmatpush.bf16.msrb.mxu2 %v1506_v16  ;;  %v1090_v17 = vld [vmem:[%s2043_s11 + $0x78] sm:$0xff] }
  0xf0   :  { %473 = vmatpush.msra.mxu3 %v458_v19  ;;  %v1524_v19 = vld [vmem:[#allocation3 + $0xa8] sm:$0xff] }
  0xf2   :  { %474 = vmatpush.msra.mxu3 %v457_v23  ;;  %v1505_v23 = vld [vmem:[#allocation3 + $0x10] sm:$0xff] }
  0xf3   :  { %907 = vmatpush.bf16.msrb.mxu2 %v1505_v23 }
  0xf4   :  { %475 = vmatpush.msra.mxu3 %v456_v25  ;;  %v1522_v25 = vld [vmem:[#allocation3 + $0x98] sm:$0xff] }
  0xf6   :  { %476 = vmatpush.msra.mxu3 %v455_v28  ;;  %v1504_v28 = vld [vmem:[#allocation3 + $0x8] sm:$0xff] }
  0xf7   :  { %908 = vmatpush.bf16.msrb.mxu2 %v1504_v28 }
  0xf8   :  { %477 = vmatpush.msra.mxu3 %v454_v31  ;;  %v1521_v31 = vld [vmem:[#allocation3 + $0x90] sm:$0xff] }
  0xfa   :  { %478 = vmatpush.msra.mxu3 %v453_v33 }
  0xfb   :  { %909 = vmatpush.bf16.msrb.mxu2 %v1503_v32 }
  0xfc   :  { %479 = vmatpush.msra.mxu3 %v452_v35  ;;  %v1512_v35 = vld [vmem:[#allocation3 + $0x48] sm:$0xff] }
  0xfd   :  { %833 = vmatpush.bf16.msrb.mxu1 %v1512_v35 }
  0xfe   :  { %480 = vmatpush.msra.mxu3 %v451_v37  ;;  %v603_v37 = vpop.permute.xlu0 %602 }
  0xff   :  { %1111 = vmatpush.msra.mxu2 %v1090_v17 }
 0x100   :  { %481 = vmatpush.msra.mxu3 %v450_v39  ;;  %v1519_v39 = vld [vmem:[#allocation3 + $0x80] sm:$0xff] }
 0x102   :  { %567 = vmatpush.msrb.mxu3 %v524_v42 }
 0x15a   :  { %v422_v40 = vpop.f32.mrf.mxu3 }
 0x15b   :  { %482 = vmatmul.f32.vlgmr.msra.gmra.mxu3 %v422_v40  ;;  %v1511_v40 = vld [vmem:[#allocation3 + $0x40] sm:$0xff] }
 0x15c   :  { %1002 = vmatpush.bf16.msra.mxu3 %v1526_v7  ;;  %834 = vmatpush.bf16.msrb.mxu1 %v1511_v40 }
 0x160   :  { %1003 = vmatpush.bf16.msra.mxu3 %v1525_v8  ;;  %1091 = vmatpush.msra.mxu1 %v1090_v17 }
 0x164   :  { %v447_v41 = vpop.f32.mrf.mxu3  ;;  %1004 = vmatpush.bf16.msra.mxu3 %v1524_v19  ;;  %v689_v19 = vld [vmem:[#allocation2] sm:$0xf] }
 0x165   :  { %502 = vmatmul.f32.vlgmr.msrb.gmra.mxu0 %v447_v41 }
 0x168   :  { %1005 = vmatpush.bf16.msra.mxu3 %v1523_v21 }
 0x16c   :  { %1006 = vmatpush.bf16.msra.mxu3 %v1522_v25 }
 0x170   :  { %1007 = vmatpush.bf16.msra.mxu3 %v1521_v31 }
 0x174   :  { %1008 = vmatpush.bf16.msra.mxu3 %v1520_v34 }
 0x178   :  { %1009 = vmatpush.bf16.msra.mxu3 %v1519_v39 }
 0x1de   :  { %v483_v45 = vpop.f32.mrf.mxu3 }
 0x1df   :  { %v506_v49 = vmul.f32 %v483_v45, %v483_v45 }
 0x1e2   :  { %v503_v51 = vpop.f32.mrf.mxu0 }
 0x1e3   :  { %v507_v53 = vsub.f32 %v503_v51, %v506_v49 }
 0x1e5   :  { %v509_v54 = vadd.f32 1e-05, %v507_v53 }
 0x1e7   :  { %1551 = vrsqrt.f32 %v509_v54  ;;  %vm516_vm4 = vweird.f32 %v509_v54 }
 0x1ed   :  { %v1552_v57 = vpop.eup %1551 }
 0x1ee   :  { %v511_v58 = vmul.f32 %v1552_v57, %v509_v54  ;;  %vm517_vm3 = vweird.f32 %v1552_v57 }
 0x1ef   :  { %vm518_vm5 = vmor %vm516_vm4, %vm517_vm3 }
 0x1f0   :  { %v512_v59 = vmul.f32 %v1552_v57, %v511_v58 }
 0x1f2   :  { %v513_v60 = vmul.f32 0.5, %v512_v59 }
 0x1f4   :  { %v514_v61 = vsub.f32 1.5, %v513_v60 }
 0x1f6   :  { %v515_v63 = vmul.f32 %v1552_v57, %v514_v61 }
 0x1f8   :  { %v519_v0 = vsel %vm518_vm5, %v1552_v57, %v515_v63  ;;  %v608_v57 = vpop.permute.xlu0 %607 }
 0x1f9   :  { %v520_v1 = vmul.f32 %v519_v0, %v508_v62 }
 0x1fb   :  { %v522_v3 = vmul.f32 %v520_v1, %v483_v45  ;;  %1371 = vmatmul.msk.f32.vlgmr.msra.gmra.mxu0 %vm525_vm6, %v520_v1 }
 0x1fd   :  { %v523_v4 = vsub.f32 %v521_v2, %v522_v3 }
 0x1ff   :  { %1372 = vmatmul.msk.f32.vlgmr.msrb.gmra.mxu3 %vm525_vm6, %v523_v4 }
 0x278   :  { %v546_v33 = vpop.f32.mrf.mxu0 }
 0x279   :  { %v572_v38 = vperm.slane %v546_v33, 0 }
 0x27b   :  { %v573_v41 = vmul.f32 %v572_v38, %v1828_v27  ;;  %v574_v43 = vmul.f32 %v572_v38, %v1822_v24  ;;  %v575_v44 = vmul.f32 %v572_v38, %v1816_v22  ;;  %v576_v45 = vmul.f32 %v572_v38, %v1810_v18  ;;  %v618_v24 = vpop.permute.xlu1 %617 }
 0x27c   :  { %v577_v47 = vmul.f32 %v572_v38, %v1805_v14 }
 0x282   :  { %v569_v42 = vpop.f32.mrf.mxu3 }
 0x283   :  { %v578_v46 = vperm.slane %v569_v42, 0 }
 0x285   :  { %v579_v48 = vadd.f32 %v578_v46, %v573_v41  ;;  %v580_v49 = vadd.f32 %v578_v46, %v574_v43  ;;  %v581_v50 = vadd.f32 %v578_v46, %v575_v44  ;;  %v582_v51 = vadd.f32 %v578_v46, %v576_v45 }
 0x286   :  { %v583_v52 = vadd.f32 %v578_v46, %v577_v47 }
 0x287   :  { %v584_v53 = vmax.f32 %v579_v48, 0.0  ;;  %v585_v54 = vmax.f32 %v580_v49, 0.0  ;;  %v586_v27 = vmax.f32 %v581_v50, 0.0  ;;  %v587_v55 = vmax.f32 %v582_v51, 0.0 }
 0x288   :  { %v588_v22 = vmax.f32 %v583_v52, 0.0 }
 0x289   :  { %v625_v58 = vmul.f32 %v603_v37, %v584_v53  ;;  %v626_v18 = vmul.f32 %v608_v57, %v585_v54  ;;  %v627_v59 = vmul.f32 %v613_v36, %v586_v27  ;;  %v628_v60 = vmul.f32 %v618_v24, %v587_v55  ;;  %v696_v37 = vld [vmem:[#allocation2 + $0x14] sm:$0x1] }
 0x28a   :  { %v629_v61 = vmul.f32 %v623_v56, %v588_v22 }
 0x28b   :  { %v630_v14 = vpack.c.bf16 %v625_v58, %v625_v58  ;;  %v631_v62 = vpack.c.bf16 %v626_v18, %v626_v18  ;;  %v632_v63 = vpack.c.bf16 %v627_v59, %v627_v59  ;;  %v633_v0 = vpack.c.bf16 %v628_v60, %v628_v60 }
 0x28c   :  { %v634_v1 = vpack.c.bf16 %v629_v61, %v629_v61 }
 0x28d   :  { %v638_v2 = vshrl.u32 %v630_v14, 16  ;;  %v646_v3 = vshrl.u32 %v631_v62, 16  ;;  %v641_v4 = vshll.u32 %v630_v14, 16  ;;  %v655_v5 = vshrl.u32 %v632_v63, 16 }
 0x28e   :  { %v664_v6 = vshrl.u32 %v633_v0, 16  ;;  %v649_v9 = vshll.u32 %v631_v62, 16  ;;  %v673_v12 = vshrl.u32 %v634_v1, 16  ;;  %v658_v15 = vshll.u32 %v632_v63, 16 }
 0x28f   :  { %v640_v7 = vrot.slane %v638_v2, 7  ;;  %v648_v8 = vrot.slane %v646_v3, 7  ;;  %v657_v13 = vrot.slane %v655_v5, 7  ;;  %v667_v16 = vshll.u32 %v633_v0, 16 }
 0x290   :  { %v666_v20 = vrot.slane %v664_v6, 7  ;;  %v676_v32 = vshll.u32 %v634_v1, 16  ;;  %v675_v35 = vrot.slane %v673_v12, 7 }
 0x291   :  { %v643_v21 = vor.u32 %v641_v4, %v640_v7  ;;  %v644_v23 = vrot.slane %v640_v7, 4  ;;  %v651_v25 = vor.u32 %v649_v9, %v648_v8  ;;  %v653_v26 = vrot.slane %v648_v8, 4 }
 0x292   :  { %v660_v28 = vor.u32 %v658_v15, %v657_v13  ;;  %v662_v29 = vrot.slane %v657_v13, 4  ;;  %v669_v31 = vor.u32 %v667_v16, %v666_v20  ;;  %v671_v34 = vrot.slane %v666_v20, 4  ;;  %v1088_v20 = vld [vmem:[%s2043_s11 + $0x68] sm:$0xff] }
 0x293   :  { %v652_v33 = vsel %vm1911_vm14, %v644_v23, %v651_v25  ;;  %v690_v36 = vsel %vm1916_vm15, %v643_v21, %v689_v19  ;;  %v678_v40 = vor.u32 %v676_v32, %v675_v35  ;;  %v680_v41 = vrot.slane %v675_v35, 4  ;;  %v1089_v19 = vld [vmem:[%s2043_s11 + $0x70] sm:$0xff]  ;;  %v1087_v23 = vld [vmem:[%s2043_s11 + $0x60] sm:$0xff]  ;;  %v1084_v32 = vld [vmem:[%s2043_s11 + $0x48] sm:$0xff] }
 0x294   :  { %v661_v38 = vsel %vm1911_vm14, %v653_v26, %v660_v28  ;;  %v670_v39 = vsel %vm1911_vm14, %v662_v29, %v669_v31  ;;  %691 = vst [vmem:[#allocation2] sm:$0xf] %v690_v36  ;;  %1112 = vmatpush.msra.mxu2 %v1089_v19  ;;  %1092 = vmatpush.msra.mxu1 %v1089_v19  ;;  %v1086_v26 = vld [vmem:[%s2043_s11 + $0x58] sm:$0xff]  ;;  %v1085_v29 = vld [vmem:[%s2043_s11 + $0x50] sm:$0xff]  ;;  %v1083_v36 = vld [vmem:[%s2043_s11 + $0x40] sm:$0xff] }
 0x295   :  { %692 = vst [vmem:[#allocation2 + $0x4] sm:$0xf] %v652_v33  ;;  %v679_v42 = vsel %vm1911_vm14, %v671_v34, %v678_v40  ;;  %v697_v43 = vsel %vm1898_vm10, %v680_v41, %v696_v37  ;;  %v1082_v40 = vld [vmem:[%s2043_s11 + $0x38] sm:$0xff] }
 0x296   :  { %693 = vst [vmem:[#allocation2 + $0x8] sm:$0xf] %v661_v38  ;;  %1113 = vmatpush.msra.mxu2 %v1088_v20  ;;  %1093 = vmatpush.msra.mxu1 %v1088_v20 }
 0x297   :  { %694 = vst [vmem:[#allocation2 + $0xc] sm:$0xf] %v670_v39 }
 0x298   :  { %695 = vst [vmem:[#allocation2 + $0x10] sm:$0xf] %v679_v42  ;;  %1114 = vmatpush.msra.mxu2 %v1087_v23  ;;  %1094 = vmatpush.msra.mxu1 %v1087_v23 }
 0x299   :  { %698 = vst [vmem:[#allocation2 + $0x14] sm:$0x1] %v697_v43 }
 0x29a   :  { %1115 = vmatpush.msra.mxu2 %v1086_v26  ;;  %1095 = vmatpush.msra.mxu1 %v1086_v26 }
 0x29b   :  { %v1539_v44 = vld [vmem:[#allocation2] sm:$0xe] }
 0x29c   :  { %v1532_v45 = vld [vmem:[#allocation2] sm:$0xff]   ;;  %1116 = vmatpush.msra.mxu2 %v1085_v29  ;;  %1096 = vmatpush.msra.mxu1 %v1085_v29 }
 0x29d   :  { %v1538_v46 = vld [vmem:[#allocation2] sm:$0xf0]  ;;  %v756_v47 = vshll.u32 %v1532_v45, 16  ;;  %910 = vmatmul.bf16.vlgmr.msrb.gmra.mxu2 %v1532_v45  ;;  %v754_v50 = vshrl.u32 %v1532_v45, 16 }
 0x29e   :  { %v1540_v48 = vor.u32 %v1539_v44, %v1538_v46  ;;  %v1502_v49 = vld [vmem:[#allocation2 + $0x8] sm:$0xff]  ;;  %1117 = vmatpush.msra.mxu2 %v1084_v32  ;;  %1097 = vmatpush.msra.mxu1 %v1084_v32  ;;  %v1081_v44 = vld [vmem:[%s2043_s11 + $0x30] sm:$0xff] }
 0x29f   :  { %v758_v51 = vrot.slane %v756_v47, 1  ;;  %v947_v53 = vrot.slane %v1502_v49, 1  ;;  %v761_v54 = vshll.u32 %v1502_v49, 16  ;;  %v703_v55 = vld [vmem:[#allocation2 + $0x10] sm:$0xf]  ;;  %v765_v61 = vshrl.u32 %v1502_v49, 16 }
 0x2a0   :  { %v946_v52 = vrot.slane %v1540_v48, 1  ;;  %v720_v56 = vld [vmem:[#allocation2 + $0x14] sm:$0x1]  ;;  %v748_v22 = vunpack.c.l.b16 %v703_v55  ;;  %1118 = vmatpush.msra.mxu2 %v1083_v36  ;;  %1098 = vmatpush.msra.mxu1 %v1083_v36  ;;  %v1080_v47 = vld [vmem:[%s2043_s11 + $0x28] sm:$0xff] }
 0x2a1   :  { %v759_v27 = vor.u32 %v758_v51, %v754_v50  ;;  %v763_v24 = vrot.slane %v761_v54, 1  ;;  %v749_v58 = vunpack.c.l.b16 %v720_v56  ;;  %v1079_v50 = vld [vmem:[%s2043_s11 + $0x20] sm:$0xff]  ;;  %v1077_v54 = vld [vmem:[%s2043_s11 + $0x10] sm:$0xff]  ;;  %v1076_v55 = vld [vmem:[%s2043_s11 + $0x8] sm:$0xff] }
 0x2a2   :  { %v948_v10 = vsel %vm316_vm1, %v946_v52, %v947_v53  ;;  %v850_v1 = vpack.c.b16 %v748_v22, %v748_v22  ;;  %1119 = vmatpush.msra.mxu2 %v1082_v40  ;;  %1099 = vmatpush.msra.mxu1 %v1082_v40  ;;  %v1078_v52 = vld [vmem:[%s2043_s11 + $0x18] sm:$0xff] }
 0x2a3   :  { %1010 = vmatmul.bf16.vlgmr.msra.gmra.mxu3 %v948_v10  ;;  %v764_v57 = vsel %vm122_vm0, %v759_v27, %v763_v24  ;;  %v752_v18 = vpack.c.b16 %v749_v58, %v748_v22  ;;  %v767_v14 = vor.u32 %v765_v61, %v763_v24  ;;  %v1075_v24 = vld [vmem:[%s2043_s11] sm:$0xff] }
 0x2a4   :  { %835 = vmatmul.bf16.vlgmr.msrb.gmra.mxu1 %v764_v57  ;;  %1120 = vmatpush.msra.mxu2 %v1081_v44  ;;  %v1149_v58 = vld [vmem:[%s2044_s12] sm:$0xff] }
 0x2a5   :  { %v769_v59 = vshll.u32 %v752_v18, 16  ;;  %v949_v60 = vrot.slane %v752_v18, 1  ;;  %v773_v2 = vshrl.u32 %v752_v18, 16  ;;  %1100 = vmatpush.msra.mxu1 %v1081_v44 }
 0x2a6   :  { %1121 = vmatpush.msra.mxu2 %v1080_v47 }
 0x2a7   :  { %v771_v62 = vrot.slane %v769_v59, 1  ;;  %v950_v63 = vsel %vm316_vm1, %v947_v53, %v949_v60  ;;  %1101 = vmatpush.msra.mxu1 %v1080_v47 }
 0x2a8   :  { %1122 = vmatpush.msra.mxu2 %v1079_v50 }
 0x2a9   :  { %v772_v0 = vsel %vm122_vm0, %v767_v14, %v771_v62  ;;  %v775_v3 = vor.u32 %v773_v2, %v771_v62  ;;  %1102 = vmatpush.msra.mxu1 %v1079_v50  ;;  %v1133_v2 = vld [vmem:[%s2037_s5] sm:$0x1]  ;;  %s1611_s5 = smov [#allocation6]  }
 0x2aa   :  { %1123 = vmatpush.msra.mxu2 %v1078_v52 }
 0x2ab   :  { %1103 = vmatpush.msra.mxu1 %v1078_v52 }
 0x2ac   :  { %1124 = vmatpush.msra.mxu2 %v1077_v54 }
 0x2ad   :  { %915 = vmatmul.bf16.gmra.mxu2 %v1502_v49  ;;  %1104 = vmatpush.msra.mxu1 %v1077_v54 }
 0x2ae   :  { %1125 = vmatpush.msra.mxu2 %v1076_v55 }
 0x2af   :  { %1105 = vmatpush.msra.mxu1 %v1076_v55 }
 0x2b0   :  { %1126 = vmatpush.msra.mxu2 %v1075_v24 }
 0x2b1   :  { %1106 = vmatpush.msra.mxu1 %v1075_v24 }
 0x2b3   :  { %1015 = vmatmul.bf16.gmra.mxu3 %v950_v63 }
 0x2b4   :  { %840 = vmatmul.bf16.gmra.mxu1 %v772_v0 }
 0x2bd   :  { %920 = vmatmul.bf16.gmra.mxu2 %v850_v1 }
 0x2c3   :  { %1020 = vmatmul.bf16.gmra.mxu3 %v949_v60 }
 0x2c4   :  { %845 = vmatmul.bf16.gmra.mxu1 %v775_v3 }
 0x320   :  { %v911_v4 = vpop.f32.mrf.mxu2 }
 0x321   :  { %v836_v5 = vpop.f32.mrf.mxu1 }
 0x322   :  { %v912_v45 = vadd.f32 %v911_v4, %v836_v5 }
 0x326   :  { %v1011_v6 = vpop.f32.mrf.mxu3 }
 0x327   :  { %v1980_v49 = vadd.f32 %v1011_v6, %v912_v45 }
 0x328   :  { %v913_v7 = vpop.f32.mrf.mxu2 }
 0x329   :  { %v838_v8 = vpop.f32.mrf.mxu1  ;;  %v1050_v10 = vmul.f32 %v1980_v49, %v1980_v49 }
 0x32a   :  { %v914_v42 = vadd.f32 %v913_v7, %v838_v8  ;;  %v1146_v7 = vld [vmem:[%s2038_s6] sm:$0x1]  ;;  %s1222_s6 = sshll.u32 %s1611_s5, 4  ;;  %s1223_s6 = int_to_ptr.vmem [resolvable:$true] %s1222_s6 }
 0x32e   :  { %v1013_v9 = vpop.f32.mrf.mxu3 }
 0x32f   :  { %v1974_v46 = vadd.f32 %v1013_v9, %v914_v42 }
 0x330   :  { %v916_v11 = vpop.f32.mrf.mxu2 }
 0x331   :  { %v841_v12 = vpop.f32.mrf.mxu1  ;;  %v1051_v56 = vmul.f32 %v1974_v46, %v1974_v46 }
 0x332   :  { %v917_v38 = vadd.f32 %v916_v11, %v841_v12 }
 0x336   :  { %v1016_v13 = vpop.f32.mrf.mxu3 }
 0x337   :  { %v1968_v43 = vadd.f32 %v1016_v13, %v917_v38 }
 0x338   :  { %v918_v15 = vpop.f32.mrf.mxu2 }
 0x339   :  { %v843_v16 = vpop.f32.mrf.mxu1  ;;  %v1052_v27 = vmul.f32 %v1968_v43, %v1968_v43 }
 0x33a   :  { %v919_v34 = vadd.f32 %v918_v15, %v843_v16 }
 0x33e   :  { %v1018_v21 = vpop.f32.mrf.mxu3 }
 0x33f   :  { %v1962_v39 = vadd.f32 %v1018_v21, %v919_v34 }
 0x340   :  { %v921_v25 = vpop.f32.mrf.mxu2 }
 0x341   :  { %v846_v28 = vpop.f32.mrf.mxu1  ;;  %v1053_v53 = vmul.f32 %v1962_v39, %v1962_v39 }
 0x342   :  { %v922_v31 = vadd.f32 %v921_v25, %v846_v28 }
 0x346   :  { %v1021_v33 = vpop.f32.mrf.mxu3 }
 0x347   :  { %v1957_v35 = vadd.f32 %v1021_v33, %v922_v31 }
 0x348   :  { %v923_v37 = vpop.f32.mrf.mxu2 }
 0x349   :  { %1041 = vmatpush.msrb.mxu0 %v1957_v35  ;;  %v848_v41 = vpop.f32.mrf.mxu1  ;;  %v1054_v51 = vmul.f32 %v1957_v35, %v1957_v35 }
 0x34b   :  { %1042 = vmatpush.msrb.mxu0 %v1962_v39 }
 0x34d   :  { %1043 = vmatpush.msrb.mxu0 %v1968_v43 }
 0x34e   :  { %v1023_v48 = vpop.f32.mrf.mxu3 }
 0x34f   :  { %1044 = vmatpush.msrb.mxu0 %v1974_v46 }
 0x351   :  { %1045 = vmatpush.msrb.mxu0 %v1980_v49 }
 0x352   :  { %1473 = vmatmul.msk.f32.vlgmr.msrb.gmra.mxu0 %vm401_vm2, %v1839_v30 }
 0x353   :  { %1066 = vmatpush.msra.mxu0 %v1054_v51 }
 0x355   :  { %1067 = vmatpush.msra.mxu0 %v1053_v53 }
 0x357   :  { %1068 = vmatpush.msra.mxu0 %v1052_v27 }
 0x359   :  { %1069 = vmatpush.msra.mxu0 %v1051_v56 }
 0x35b   :  { %1070 = vmatpush.msra.mxu0 %v1050_v10 }
 0x35c   :  { %1474 = vmatmul.msk.f32.vlgmr.msra.gmra.mxu0 %vm401_vm2, %v1839_v30 }
 0x35d   :  { %1168 = vmatpush.msrb.mxu0 %v1149_v58 }
 0x35f   :  { %1191 = vmatpush.msra.mxu0 %v1149_v58 }
 0x3cf   :  { %v1047_v57 = vpop.f32.mrf.mxu0 }
 0x3d0   :  { %1107 = vmatmul.f32.vlgmr.msra.gmra.mxu1 %v1047_v57 }
 0x3d9   :  { %v1072_v22 = vpop.f32.mrf.mxu0 }
 0x3da   :  { %1127 = vmatmul.f32.vlgmr.msra.gmra.mxu2 %v1072_v22 }
 0x44d   :  { %v1108_v18 = vpop.f32.mrf.mxu1 }
 0x44e   :  { %v1131_v59 = vmul.f32 %v1108_v18, %v1108_v18 }
 0x45d   :  { %v1128_v60 = vpop.f32.mrf.mxu2 }
 0x45e   :  { %v1132_v30 = vsub.f32 %v1128_v60, %v1131_v59 }
 0x460   :  { %v1134_v61 = vadd.f32 1e-05, %v1132_v30 }
 0x462   :  { %1553 = vrsqrt.f32 %v1134_v61  ;;  %vm1141_vm1 = vweird.f32 %v1134_v61 }
 0x468   :  { %v1554_v14 = vpop.eup %1553 }
 0x469   :  { %v1136_v62 = vmul.f32 %v1554_v14, %v1134_v61  ;;  %vm1142_vm0 = vweird.f32 %v1554_v14 }
 0x46a   :  { %vm1143_vm2 = vmor %vm1141_vm1, %vm1142_vm0 }
 0x46b   :  { %v1137_v63 = vmul.f32 %v1554_v14, %v1136_v62 }
 0x46d   :  { %v1138_v0 = vmul.f32 0.5, %v1137_v63 }
 0x46f   :  { %v1139_v1 = vsub.f32 1.5, %v1138_v0 }
 0x471   :  { %v1140_v3 = vmul.f32 %v1554_v14, %v1139_v1 }
 0x473   :  { %v1144_v4 = vsel %vm1143_vm2, %v1554_v14, %v1140_v3 }
 0x474   :  { %v1145_v5 = vmul.f32 %v1144_v4, %v1133_v2 }
 0x476   :  { %1475 = vmatmul.msk.f32.vlgmr.msrb.gmra.mxu0 %vm525_vm6, %v1145_v5  ;;  %v1147_v6 = vmul.f32 %v1145_v5, %v1108_v18 }
 0x478   :  { %v1148_v8 = vsub.f32 %v1146_v7, %v1147_v6 }
 0x47e   :  { %1476 = vmatmul.msk.f32.vlgmr.msra.gmra.mxu0 %vm525_vm6, %v1148_v8 }
 0x4f3   :  { %v1170_v9 = vpop.f32.mrf.mxu0 }
 0x4f4   :  { %v1196_v11 = vperm.slane %v1170_v9, 0 }
 0x4f6   :  { %v1197_v12 = vmul.f32 %v1196_v11, %v1980_v49  ;;  %v1198_v15 = vmul.f32 %v1196_v11, %v1974_v46  ;;  %v1199_v16 = vmul.f32 %v1196_v11, %v1968_v43  ;;  %v1200_v17 = vmul.f32 %v1196_v11, %v1962_v39 }
 0x4f7   :  { %v1201_v20 = vmul.f32 %v1196_v11, %v1957_v35 }
 0x4fb   :  { %v1193_v13 = vpop.f32.mrf.mxu0 }
 0x4fc   :  { %v1202_v19 = vperm.slane %v1193_v13, 0 }
 0x4fe   :  { %v1203_v21 = vadd.f32 %v1202_v19, %v1197_v12  ;;  %v1204_v23 = vadd.f32 %v1202_v19, %v1198_v15  ;;  %v1205_v25 = vadd.f32 %v1202_v19, %v1199_v16  ;;  %v1206_v26 = vadd.f32 %v1202_v19, %v1200_v17 }
 0x4ff   :  { %v1207_v28 = vadd.f32 %v1202_v19, %v1201_v20 }
 0x500   :  { %v1208_v29 = vmax.f32 %v1203_v21, 0.0  ;;  %v1209_v31 = vmax.f32 %v1204_v23, 0.0  ;;  %v1210_v32 = vmax.f32 %v1205_v25, 0.0  ;;  %v1211_v33 = vmax.f32 %v1206_v26, 0.0 }
 0x501   :  { %v1212_v34 = vmax.f32 %v1207_v28, 0.0 }
 0x502   :  { %1213 = vst [vmem:[#allocation6] sm:$0xff] %v1208_v29 }
 0x503   :  { %1214 = vst [vmem:[#allocation6 + $0x8] sm:$0xff] %v1209_v31 }
 0x504   :  { %1215 = vst [vmem:[#allocation6 + $0x10] sm:$0xff] %v1210_v32 }
 0x505   :  { %1216 = vst [vmem:[#allocation6 + $0x18] sm:$0xff] %v1211_v33 }
 0x506   :  { %1217 = vst [vmem:[#allocation6 + $0x20] sm:$0xff] %v1212_v34 }
 0x507   :  { %1230 = dma.vmem_to_hbm [thread:$0]  %s1223_s6, 640, %s1225_s16, [#allocation5], %s1612_s17, %s1612_s17, %s1613_s18  }
 0x508   :  { %1605 = dma.done.wait [#allocation5], 640  }
 0x509   :  { %1606 = vsyncadd [#allocation5], 4294966656 }
 0x50a   :  { %1235 = vsyncpa [#allocation4], 1 }
 0x50b   :  { %1236 = vsyncpa [#allocation5], 1 }

</bundles_post_ra>
